<compile_context>
chip_gen: v6e
topology: v6e:2x2x1
jax: 0.10.0
libtpu: 0.0.40
codegen_flags: <defaults>
</compile_context>

<pallas_src>
import jax
import jax.numpy as jnp
from jax.experimental import pallas as pl
from jax.experimental.pallas import tpu as pltpu


def simple_rnn_forward(x, w_ih, w_hh, b_ih, b_hh, w_fc, b_fc):
    """x: (B, T, I) batch-first, like the PyTorch module. Returns (B, O)."""
    B, T, I = x.shape
    H = w_hh.shape[0]
    O = w_fc.shape[0]

    # Wrapper-side layout plumbing (free relative to the kernel's critical path).
    x = x.astype(jnp.float32)                                  # (B, T, I), no transpose
    wih_t = jnp.transpose(w_ih).astype(jnp.float32)            # (I, H)
    whh_t = jnp.transpose(w_hh).astype(jnp.float32)            # (H, H)
    b = (b_ih + b_hh).reshape(1, 1, H).astype(jnp.float32)     # fused RNN bias
    if O == 1:
        wfc = w_fc.reshape(1, H).astype(jnp.float32)           # row layout -> lane reduce
    else:
        wfc = jnp.transpose(w_fc).astype(jnp.float32)          # (H, O), no in-kernel .T
    bfc = b_fc.reshape(1, O).astype(jnp.float32)               # (1, O)

    def kernel(x_ref, wih_ref, whh_ref, b_ref, wfc_ref, bfc_ref, out_ref):
        # ---- Hoisted input projection: u = x @ W_ih^T + (b_ih + b_hh), all T at once.
        if I == 1:
            # (B, T, 1) * (1, 1, H) -> (B, T, H): pure VPU broadcast multiply.
            u = x_ref[...] * wih_ref[...].reshape(1, 1, H) + b_ref[...]
        else:
            x_flat = x_ref[...].reshape(B * T, I)
            u = (jnp.dot(x_flat, wih_ref[...],
                         preferred_element_type=jnp.float32).reshape(B, T, H)
                 + b_ref[...])

        whh = whh_ref[...]                                     # (H, H), loaded once

        # ---- Serial recurrence, h carried in vregs. Step 0: h0 == 0 so no matmul.
        h = jnp.tanh(u[:, 0, :])                               # (B, H)
        for t in range(1, T):                                  # static unroll (small T)
            h = jnp.tanh(jnp.dot(h, whh, preferred_element_type=jnp.float32)
                         + u[:, t, :])

        # ---- Final Linear on the last hidden state.
        if O == 1:
            # Lane reduction instead of a degenerate (B,H)x(H,1) MXU pass.
            out = jnp.sum(h * wfc_ref[...], axis=-1, keepdims=True) + bfc_ref[...]
        else:
            out = jnp.dot(h, wfc_ref[...],
                          preferred_element_type=jnp.float32) + bfc_ref[...]
        out_ref[...] = out.astype(out_ref.dtype)

    vmem = pl.BlockSpec(memory_space=pltpu.MemorySpace.VMEM)
    return pl.pallas_call(
        kernel,
        out_shape=jax.ShapeDtypeStruct((B, O), jnp.float32),
        in_specs=[vmem] * 6,
        out_specs=vmem,
    )(x, wih_t, whh_t, b, wfc, bfc)


def reference_forward(x, w_ih, w_hh, b_ih, b_hh, w_fc, b_fc):
    """Pure-JAX reference mirroring torch nn.RNN(batch_first=True) + Linear."""
    B, T, I = x.shape
    H = w_hh.shape[0]
    h = jnp.zeros((B, H), jnp.float32)
    for t in range(T):
        h = jnp.tanh(x[:, t, :] @ w_ih.T + b_ih + h @ w_hh.T + b_hh)
    return h @ w_fc.T + b_fc


if __name__ == "__main__":
    hidden_size = 10
    input_size = 1
    output_size = 1
    seq_length = 5
    batch = 10

    key = jax.random.PRNGKey(0)
    kx, k1, k2, k3, k4, k5, k6 = jax.random.split(key, 7)

    # Deterministic parameter init (PyTorch-style uniform(-1/sqrt(H), 1/sqrt(H))).
    s = 1.0 / jnp.sqrt(jnp.float32(hidden_size))
    w_ih = jax.random.uniform(k1, (hidden_size, input_size), jnp.float32, -s, s)
    w_hh = jax.random.uniform(k2, (hidden_size, hidden_size), jnp.float32, -s, s)
    b_ih = jax.random.uniform(k3, (hidden_size,), jnp.float32, -s, s)
    b_hh = jax.random.uniform(k4, (hidden_size,), jnp.float32, -s, s)
    w_fc = jax.random.uniform(k5, (output_size, hidden_size), jnp.float32, -s, s)
    b_fc = jax.random.uniform(k6, (output_size,), jnp.float32, -s, s)

    x = jax.random.normal(kx, (batch, seq_length, input_size), jnp.float32)

    out = simple_rnn_forward(x, w_ih, w_hh, b_ih, b_hh, w_fc, b_fc)
    out = jax.block_until_ready(out)

    ref = reference_forward(x, w_ih, w_hh, b_ih, b_hh, w_fc, b_fc)
    assert out.shape == (batch, output_size)
    assert jnp.allclose(out, ref, atol=1e-5, rtol=1e-5)

    print("KERNEL_OK")
</pallas_src>

<mosaic_0001>
module attributes {stable_mosaic.version = 11 : i64} {
  func.func @kernel(%arg0: memref<10x5x1xf32, #tpu.memory_space<vmem>>, %arg1: memref<1x10xf32, #tpu.memory_space<vmem>>, %arg2: memref<10x10xf32, #tpu.memory_space<vmem>>, %arg3: memref<1x1x10xf32, #tpu.memory_space<vmem>>, %arg4: memref<1x10xf32, #tpu.memory_space<vmem>>, %arg5: memref<1x1xf32, #tpu.memory_space<vmem>>, %arg6: memref<10x1xf32, #tpu.memory_space<vmem>>) attributes {dimension_semantics = [], scalar_prefetch = 0 : i64, scratch_operands = 0 : i64, tpu.core_type = #tpu.core_type<tc>} {
    %c0 = arith.constant 0 : index
    %c0_0 = arith.constant 0 : index
    %c0_1 = arith.constant 0 : index
    %0 = vector.load %arg0[%c0, %c0_0, %c0_1] : memref<10x5x1xf32, #tpu.memory_space<vmem>>, vector<10x5x1xf32>
    %c0_2 = arith.constant 0 : index
    %c0_3 = arith.constant 0 : index
    %1 = vector.load %arg1[%c0_2, %c0_3] : memref<1x10xf32, #tpu.memory_space<vmem>>, vector<1x10xf32>
    %2 = vector.shape_cast %1 : vector<1x10xf32> to vector<1x1x10xf32>
    %3 = vector.broadcast %0 : vector<10x5x1xf32> to vector<10x5x10xf32>
    %4 = vector.broadcast %2 : vector<1x1x10xf32> to vector<10x5x10xf32>
    %5 = arith.mulf %3, %4 : vector<10x5x10xf32>
    %c0_4 = arith.constant 0 : index
    %c0_5 = arith.constant 0 : index
    %c0_6 = arith.constant 0 : index
    %6 = vector.load %arg3[%c0_4, %c0_5, %c0_6] : memref<1x1x10xf32, #tpu.memory_space<vmem>>, vector<1x1x10xf32>
    %7 = vector.broadcast %6 : vector<1x1x10xf32> to vector<10x5x10xf32>
    %8 = arith.addf %5, %7 : vector<10x5x10xf32>
    %c0_7 = arith.constant 0 : index
    %c0_8 = arith.constant 0 : index
    %9 = vector.load %arg2[%c0_7, %c0_8] : memref<10x10xf32, #tpu.memory_space<vmem>>, vector<10x10xf32>
    %10 = vector.extract_strided_slice %8 {offsets = [0, 0, 0], sizes = [10, 1, 10], strides = [1, 1, 1]} : vector<10x5x10xf32> to vector<10x1x10xf32>
    %11 = vector.shape_cast %10 : vector<10x1x10xf32> to vector<10x10xf32>
    %12 = math.tanh %11 : vector<10x10xf32>
    %cst = arith.constant dense<0.000000e+00> : vector<10x10xf32>
    %13 = tpu.matmul %12, %9, %cst {dimension_numbers = #tpu.dot_dimension_numbers<[1], [0], [0], [1], [0, 0, 1, 1], [], []>} : vector<10x10xf32>, vector<10x10xf32>, vector<10x10xf32> -> vector<10x10xf32>
    %14 = vector.extract_strided_slice %8 {offsets = [0, 1, 0], sizes = [10, 1, 10], strides = [1, 1, 1]} : vector<10x5x10xf32> to vector<10x1x10xf32>
    %15 = vector.shape_cast %14 : vector<10x1x10xf32> to vector<10x10xf32>
    %16 = arith.addf %13, %15 : vector<10x10xf32>
    %17 = math.tanh %16 : vector<10x10xf32>
    %cst_9 = arith.constant dense<0.000000e+00> : vector<10x10xf32>
    %18 = tpu.matmul %17, %9, %cst_9 {dimension_numbers = #tpu.dot_dimension_numbers<[1], [0], [0], [1], [0, 0, 1, 1], [], []>} : vector<10x10xf32>, vector<10x10xf32>, vector<10x10xf32> -> vector<10x10xf32>
    %19 = vector.extract_strided_slice %8 {offsets = [0, 2, 0], sizes = [10, 1, 10], strides = [1, 1, 1]} : vector<10x5x10xf32> to vector<10x1x10xf32>
    %20 = vector.shape_cast %19 : vector<10x1x10xf32> to vector<10x10xf32>
    %21 = arith.addf %18, %20 : vector<10x10xf32>
    %22 = math.tanh %21 : vector<10x10xf32>
    %cst_10 = arith.constant dense<0.000000e+00> : vector<10x10xf32>
    %23 = tpu.matmul %22, %9, %cst_10 {dimension_numbers = #tpu.dot_dimension_numbers<[1], [0], [0], [1], [0, 0, 1, 1], [], []>} : vector<10x10xf32>, vector<10x10xf32>, vector<10x10xf32> -> vector<10x10xf32>
    %24 = vector.extract_strided_slice %8 {offsets = [0, 3, 0], sizes = [10, 1, 10], strides = [1, 1, 1]} : vector<10x5x10xf32> to vector<10x1x10xf32>
    %25 = vector.shape_cast %24 : vector<10x1x10xf32> to vector<10x10xf32>
    %26 = arith.addf %23, %25 : vector<10x10xf32>
    %27 = math.tanh %26 : vector<10x10xf32>
    %cst_11 = arith.constant dense<0.000000e+00> : vector<10x10xf32>
    %28 = tpu.matmul %27, %9, %cst_11 {dimension_numbers = #tpu.dot_dimension_numbers<[1], [0], [0], [1], [0, 0, 1, 1], [], []>} : vector<10x10xf32>, vector<10x10xf32>, vector<10x10xf32> -> vector<10x10xf32>
    %29 = vector.extract_strided_slice %8 {offsets = [0, 4, 0], sizes = [10, 1, 10], strides = [1, 1, 1]} : vector<10x5x10xf32> to vector<10x1x10xf32>
    %30 = vector.shape_cast %29 : vector<10x1x10xf32> to vector<10x10xf32>
    %31 = arith.addf %28, %30 : vector<10x10xf32>
    %32 = math.tanh %31 : vector<10x10xf32>
    %c0_12 = arith.constant 0 : index
    %c0_13 = arith.constant 0 : index
    %33 = vector.load %arg4[%c0_12, %c0_13] : memref<1x10xf32, #tpu.memory_space<vmem>>, vector<1x10xf32>
    %34 = vector.broadcast %33 : vector<1x10xf32> to vector<10x10xf32>
    %35 = arith.mulf %32, %34 : vector<10x10xf32>
    %cst_14 = arith.constant dense<0.000000e+00> : vector<10xf32>
    %36 = vector.multi_reduction <add>, %35, %cst_14 [1] : vector<10x10xf32> to vector<10xf32>
    %37 = vector.shape_cast %36 : vector<10xf32> to vector<10x1xf32>
    %c0_15 = arith.constant 0 : index
    %c0_16 = arith.constant 0 : index
    %38 = vector.load %arg5[%c0_15, %c0_16] : memref<1x1xf32, #tpu.memory_space<vmem>>, vector<1x1xf32>
    %39 = vector.broadcast %38 : vector<1x1xf32> to vector<10x1xf32>
    %40 = arith.addf %37, %39 : vector<10x1xf32>
    %c0_17 = arith.constant 0 : index
    %c0_18 = arith.constant 0 : index
    %41 = vector.load %arg6[%c0_17, %c0_18] : memref<10x1xf32, #tpu.memory_space<vmem>>, vector<10x1xf32>
    tpu.vector_store %arg6[%c0_17, %c0_18], %40 {strides = array<i32>} : memref<10x1xf32, #tpu.memory_space<vmem>>, vector<10x1xf32>,
    return
  }
}

</mosaic_0001>

<bundles_post_ra>
// kernel: tpu_custom_call.1
= control target key start
LH: loop header
LB: loop body
LE: loop exit
PB: predicated region body
PF: predicated region fallthrough
CT: control target
= control target key end

     0   :  { %v716_v0 = vmov 0   ;;  %vm197_vm0 = vcmask 1041408   ;;  %vm142_vm1 = vcmask 1041409   ;;  %vm145_vm2 = vcmask 1042434   ;;  %s969_s0 = inlined_call_operand.vmem [shape: f32[10,5,1], index: 0, kind: input, shape index: {}]   ;;  %s970_s2 = inlined_call_operand.vmem [shape: f32[10,10], index: 2, kind: input, shape index: {}]   ;;  %s971_s1 = inlined_call_operand.vmem [shape: f32[1,10], index: 1, kind: input, shape index: {}]   ;;  %s972_s3 = inlined_call_operand.vmem [shape: f32[1,1,10], index: 3, kind: input, shape index: {}]   ;;  %s973_s5 = inlined_call_operand.<no memory space> [shape: f32[1,1], index: 5, kind: input, shape index: {}]   ;;  %s974_s4 = inlined_call_operand.vmem [shape: f32[1,10], index: 4, kind: input, shape index: {}]   ;;  %s975_s6 = inlined_call_operand.vmem [shape: f32[10,1], index: 6, kind: output, shape index: {}]  }
   0x1   :  { %679 = vset.pattern.permute.xlu1 %v716_v0  ;;  %678 = vset.pattern.permute.xlu0 %v716_v0  ;;  %v26_v1 = vld [vmem:[%s969_s0 + $0x8] sm:$0x1f]  ;;  %v25_v2 = vld [vmem:[%s969_s0] sm:$0x1f]  ;;  %v27_v3 = vld [vmem:[%s969_s0 + $0x10] sm:$0x1f] }
   0x2   :  { %43 = vperm.xlu0 %678, %v26_v1   ;;  %38 = vperm.xlu1 %679, %v25_v2   ;;  %v28_v4 = vld [vmem:[%s969_s0 + $0x18] sm:$0x1f]  ;;  %v29_v5 = vld [vmem:[%s969_s0 + $0x20] sm:$0x1f]  ;;  %v30_v6 = vld [vmem:[%s969_s0 + $0x28] sm:$0x1f] }
   0x3   :  { %v31_v7 = vld [vmem:[%s969_s0 + $0x30] sm:$0x1f]  ;;  %v32_v8 = vld [vmem:[%s969_s0 + $0x38] sm:$0x1f]  ;;  %v34_v9 = vld [vmem:[%s969_s0 + $0x48] sm:$0x1f] }
   0x4   :  { %v33_v10 = vld [vmem:[%s969_s0 + $0x40] sm:$0x1f]  ;;  %v785_v11 = vld [vmem:[%s970_s2 + $0x8] sm:$0x3]  ;;  %vm148_vm3 = vcmask 1043459   ;;  %vm151_vm4 = vcmask 1044484  }
   0x5   :  { %649 = vmatprep.subr.msk.mxu0 %vm197_vm0, %v785_v11  ;;  %656 = vmatprep.subr.msk.mxu1 %vm197_vm0, %v785_v11  ;;  %v798_v12 = vld [vmem:[%s970_s2] sm:$0xff]  ;;  %vm154_vm5 = vcmask 1045509   ;;  %vm157_vm6 = vcmask 1046534   ;;  %vm160_vm7 = vcmask 1047559   ;;  %vm192_vm8 = vcmask 80896  }
   0x6   :  { %48 = vperm.xlu0 %678, %v27_v3   ;;  %53 = vperm.xlu1 %679, %v28_v4   ;;  %v811_v13 = vld [vmem:[%s971_s1] ss:$0 sm:$0xff]  ;;  %vm596_vm9 = vcmask 74752   ;;  %vm611_vm10 = vcmask 1024   ;;  %vm609_vm11 = vcmask 7168  }
   0x7   :  { %650 = vmatpush3.msk.msra.mxu0 %vm197_vm0, %v785_v11  ;;  %657 = vmatpush3.msk.msra.mxu1 %vm197_vm0, %v785_v11  ;;  %v816_v14 = vld [vmem:[%s972_s3] ss:$0 sm:$0xff] }
   0x8   :  { %651 = vmatprep.subr.mxu0 %v798_v12  ;;  %658 = vmatprep.subr.mxu1 %v798_v12 }
   0x9   :  { %652 = vmatpush3.msra.mxu0 %v798_v12  ;;  %659 = vmatpush3.msra.mxu1 %v798_v12 }
   0xa   :  { %58 = vperm.xlu0 %678, %v29_v5   ;;  %63 = vperm.xlu1 %679, %v30_v6  }
   0xb   :  { %663 = vmatprep.subr.msk.mxu0 %vm197_vm0, %v785_v11  ;;  %670 = vmatprep.subr.msk.mxu1 %vm197_vm0, %v785_v11 }
   0xe   :  { %68 = vperm.xlu0 %678, %v31_v7   ;;  %73 = vperm.xlu1 %679, %v32_v8  }
  0x12   :  { %83 = vperm.xlu0 %678, %v34_v9   ;;  %78 = vperm.xlu1 %679, %v33_v10  }
  0x7d   :  { %v44_v15 = vpop.permute.xlu0 %43  ;;  %v39_v16 = vpop.permute.xlu1 %38 }
  0x7e   :  { %v93_v17 = vmul.f32 %v811_v13, %v44_v15  ;;  %v92_v18 = vmul.f32 %v811_v13, %v39_v16 }
  0x80   :  { %v110_v19 = vadd.f32 %v816_v14, %v93_v17  ;;  %v109_v20 = vadd.f32 %v816_v14, %v92_v18 }
  0x81   :  { %v49_v21 = vpop.permute.xlu0 %48  ;;  %v54_v22 = vpop.permute.xlu1 %53 }
  0x82   :  { %680 = vtanh.f32 %v110_v19  ;;  %v279_v23 = vrot.slane %v110_v19, 1  ;;  %v381_v24 = vrot.slane %v110_v19, 2  ;;  %v483_v25 = vrot.slane %v110_v19, 3 }
  0x83   :  { %682 = vtanh.f32 %v109_v20  ;;  %v174_v26 = vrot.slane %v109_v20, 1  ;;  %v278_v27 = vrot.slane %v109_v20, 2  ;;  %v380_v28 = vrot.slane %v109_v20, 3 }
  0x84   :  { %v482_v29 = vrot.slane %v109_v20, 4  ;;  %v94_v30 = vmul.f32 %v811_v13, %v49_v21  ;;  %v95_v31 = vmul.f32 %v811_v13, %v54_v22 }
  0x85   :  { %v59_v32 = vpop.permute.xlu0 %58  ;;  %v64_v33 = vpop.permute.xlu1 %63  ;;  %v175_v34 = vsel %vm142_vm1, %v110_v19, %v174_v26  ;;  %v280_v35 = vsel %vm142_vm1, %v279_v23, %v278_v27  ;;  %v382_v36 = vsel %vm142_vm1, %v381_v24, %v380_v28 }
  0x86   :  { %v828_v37 = vadd.f32 %v816_v14, %v94_v30  ;;  %v831_v38 = vadd.f32 %v816_v14, %v95_v31  ;;  %v96_v39 = vmul.f32 %v811_v13, %v59_v32  ;;  %v97_v40 = vmul.f32 %v811_v13, %v64_v33 }
  0x87   :  { %v836_v41 = vsel %vm142_vm1, %v483_v25, %v482_v29 }
  0x88   :  { %684 = vtanh.f32 %v828_v37  ;;  %v176_v42 = vrot.slane %v828_v37, 7  ;;  %v383_v43 = vrot.slane %v828_v37, 1  ;;  %v485_v44 = vrot.slane %v828_v37, 2 }
  0x89   :  { %686 = vtanh.f32 %v831_v38  ;;  %v844_v45 = vadd.f32 %v816_v14, %v96_v39  ;;  %v847_v46 = vadd.f32 %v816_v14, %v97_v40  ;;  %v69_v47 = vpop.permute.xlu0 %68  ;;  %v74_v48 = vpop.permute.xlu1 %73  ;;  %v178_v49 = vrot.slane %v831_v38, 6 }
  0x8a   :  { %v98_v50 = vmul.f32 %v811_v13, %v69_v47  ;;  %v99_v51 = vmul.f32 %v811_v13, %v74_v48  ;;  %v177_v52 = vsel %vm145_vm2, %v176_v42, %v175_v34  ;;  %v281_v53 = vsel %vm145_vm2, %v828_v37, %v280_v35 }
  0x8b   :  { %688 = vtanh.f32 %v844_v45  ;;  %v179_v54 = vsel %vm148_vm3, %v178_v49, %v177_v52  ;;  %v180_v55 = vrot.slane %v844_v45, 5  ;;  %v182_v56 = vrot.slane %v847_v46, 4 }
  0x8c   :  { %v860_v57 = vadd.f32 %v816_v14, %v98_v50  ;;  %v863_v58 = vadd.f32 %v816_v14, %v99_v51  ;;  %690 = vtanh.f32 %v847_v46  ;;  %v282_v59 = vrot.slane %v831_v38, 7 }
  0x8d   :  { %v84_v60 = vpop.permute.xlu0 %83  ;;  %v79_v61 = vpop.permute.xlu1 %78  ;;  %v181_v62 = vsel %vm151_vm4, %v180_v55, %v179_v54  ;;  %v284_v63 = vrot.slane %v844_v45, 6  ;;  %v286_v0 = vrot.slane %v847_v46, 5  ;;  %v384_v1 = vsel %vm145_vm2, %v383_v43, %v382_v36 }
  0x8e   :  { %v101_v2 = vmul.f32 %v811_v13, %v84_v60  ;;  %v100_v3 = vmul.f32 %v811_v13, %v79_v61  ;;  %692 = vtanh.f32 %v860_v57  ;;  %v183_v4 = vsel %vm154_vm5, %v182_v56, %v181_v62 }
  0x8f   :  { %v681_v5 = vpop.eup %680  ;;  %694 = vtanh.f32 %v863_v58  ;;  %v184_v6 = vrot.slane %v860_v57, 3  ;;  %v186_v7 = vrot.slane %v863_v58, 2  ;;  %v283_v8 = vsel %vm148_vm3, %v282_v59, %v281_v53 }
  0x90   :  { %v683_v9 = vpop.eup %682  ;;  %v118_v10 = vadd.f32 %v816_v14, %v101_v2  ;;  %v117_v15 = vadd.f32 %v816_v14, %v100_v3  ;;  %v141_v16 = vrot.slane %v681_v5, 7  ;;  %v285_v13 = vsel %vm151_vm4, %v284_v63, %v283_v8 }
  0x91   :  { %v185_v17 = vsel %vm157_vm6, %v184_v6, %v183_v4  ;;  %v287_v18 = vsel %vm154_vm5, %v286_v0, %v285_v13  ;;  %v288_v19 = vrot.slane %v860_v57, 4  ;;  %v290_v20 = vrot.slane %v863_v58, 3 }
  0x92   :  { %696 = vtanh.f32 %v117_v15  ;;  %v143_v21 = vsel %vm142_vm1, %v141_v16, %v683_v9  ;;  %v188_v22 = vrot.slane %v117_v15, 1  ;;  %v888_v23 = vsel %vm160_vm7, %v186_v7, %v185_v17 }
  0x93   :  { %698 = vtanh.f32 %v118_v10  ;;  %v292_v14 = vrot.slane %v117_v15, 2  ;;  %v293_v24 = vrot.slane %v118_v10, 1  ;;  %v289_v25 = vsel %vm157_vm6, %v288_v19, %v287_v18 }
  0x94   :  { %v189_v26 = vsel %vm142_vm1, %v118_v10, %v188_v22  ;;  %v893_v27 = vsel %vm160_vm7, %v290_v20, %v289_v25  ;;  %v394_v28 = vrot.slane %v117_v15, 3  ;;  %v395_v29 = vrot.slane %v118_v10, 2 }
  0x95   :  { %v685_v30 = vpop.eup %684  ;;  %v896_v31 = vsel %vm142_vm1, %v293_v24, %v292_v14  ;;  %v385_v32 = vsel %vm148_vm3, %v831_v38, %v384_v1  ;;  %v386_v33 = vrot.slane %v844_v45, 7  ;;  %v388_v34 = vrot.slane %v847_v46, 6 }
  0x96   :  { %v687_v35 = vpop.eup %686  ;;  %v144_v36 = vrot.slane %v685_v30, 6  ;;  %v903_v39 = vsel %vm142_vm1, %v395_v29, %v394_v28  ;;  %v390_v40 = vrot.slane %v860_v57, 5  ;;  %v392_v42 = vrot.slane %v863_v58, 4 }
  0x97   :  { %v147_v43 = vrot.slane %v687_v35, 5  ;;  %v387_v47 = vsel %vm151_vm4, %v386_v33, %v385_v32  ;;  %v496_v48 = vrot.slane %v117_v15, 4  ;;  %v497_v49 = vrot.slane %v118_v10, 3  ;;  %v631_v35 = vld [vmem:[%s974_s4] ss:$0 sm:$0xff] }
  0x98   :  { %v689_v50 = vpop.eup %688  ;;  %v146_v51 = vsel %vm145_vm2, %v144_v36, %v143_v21  ;;  %v389_v52 = vsel %vm154_vm5, %v388_v34, %v387_v47  ;;  %v486_v53 = vsel %vm145_vm2, %v485_v44, %v836_v41  ;;  %v487_v54 = vrot.slane %v831_v38, 1 }
  0x99   :  { %v691_v55 = vpop.eup %690  ;;  %v149_v56 = vsel %vm148_vm3, %v147_v43, %v146_v51  ;;  %v150_v59 = vrot.slane %v689_v50, 4  ;;  %v391_v60 = vsel %vm157_vm6, %v390_v40, %v389_v52  ;;  %v918_v61 = vsel %vm142_vm1, %v497_v49, %v496_v48 }
  0x9a   :  { %v153_v62 = vrot.slane %v691_v55, 3  ;;  %v393_v63 = vsel %vm160_vm7, %v392_v42, %v391_v60  ;;  %v488_v0 = vsel %vm148_vm3, %v487_v54, %v486_v53  ;;  %v490_v37 = vrot.slane %v847_v46, 7 }
  0x9b   :  { %v693_v1 = vpop.eup %692  ;;  %v152_v41 = vsel %vm151_vm4, %v150_v59, %v149_v56  ;;  %v489_v38 = vsel %vm151_vm4, %v844_v45, %v488_v0  ;;  %v492_v44 = vrot.slane %v860_v57, 6  ;;  %v494_v2 = vrot.slane %v863_v58, 5 }
  0x9c   :  { %v695_v3 = vpop.eup %694  ;;  %v156_v4 = vrot.slane %v693_v1, 2  ;;  %v491_v5 = vsel %vm154_vm5, %v490_v37, %v489_v38  ;;  %v155_v6 = vsel %vm154_vm5, %v153_v62, %v152_v41 }
  0x9d   :  { %v159_v7 = vrot.slane %v695_v3, 1  ;;  %v493_v46 = vsel %vm157_vm6, %v492_v44, %v491_v5 }
  0x9e   :  { %v158_v8 = vsel %vm157_vm6, %v156_v4, %v155_v6  ;;  %v495_v9 = vsel %vm160_vm7, %v494_v2, %v493_v46 }
  0x9f   :  { %v697_v10 = vpop.eup %696  ;;  %v161_v45 = vsel %vm160_vm7, %v159_v7, %v158_v8 }
  0xa0   :  { %v699_v57 = vpop.eup %698  ;;  %653 = vmatprep.mubr.msk.f32.mxu0 %vm192_vm8, %v161_v45 }
  0xa1   :  { %v162_v58 = vrot.slane %v699_v57, 7 }
  0xa3   :  { %v163_v15 = vsel %vm142_vm1, %v162_v58, %v697_v10 }
  0xa4   :  { %654 = vmatmul.mubr.msk.f32.vlgmr.msra.gmra.mxu0 %vm192_vm8, %v163_v15 }
  0xa5   :  { %664 = vmatpush3.msk.msra.mxu0 %vm197_vm0, %v785_v11 }
  0xa6   :  { %665 = vmatprep.subr.mxu0 %v798_v12 }
  0xa7   :  { %666 = vmatpush3.msra.mxu0 %v798_v12 }
 0x164   :  { %v655_v16 = vpop.f32.mrf.mxu0 }
 0x165   :  { %v273_v13 = vadd.f32 %v655_v16, %v189_v26 }
 0x166   :  { %v267_v17 = vpop.f32.mrf.mxu0 }
 0x167   :  { %v268_v18 = vadd.f32 %v267_v17, %v888_v23 }
 0x169   :  { %700 = vtanh.f32 %v268_v18 }
 0x16a   :  { %702 = vtanh.f32 %v273_v13 }
 0x176   :  { %v701_v19 = vpop.eup %700 }
 0x177   :  { %v703_v20 = vpop.eup %702  ;;  %660 = vmatprep.mubr.msk.f32.mxu1 %vm192_vm8, %v701_v19 }
 0x178   :  { %661 = vmatmul.mubr.msk.f32.vlgmr.msra.gmra.mxu1 %vm192_vm8, %v703_v20 }
 0x179   :  { %671 = vmatpush3.msk.msra.mxu1 %vm197_vm0, %v785_v11 }
 0x17a   :  { %672 = vmatprep.subr.mxu1 %v798_v12 }
 0x17b   :  { %673 = vmatpush3.msra.mxu1 %v798_v12 }
 0x238   :  { %v662_v21 = vpop.f32.mrf.mxu1 }
 0x239   :  { %v375_v22 = vadd.f32 %v662_v21, %v896_v31 }
 0x23a   :  { %v369_v14 = vpop.f32.mrf.mxu1 }
 0x23b   :  { %v370_v23 = vadd.f32 %v369_v14, %v893_v27  ;;  %v11_v27 = vstv %s973_s5 }
 0x23c   :  { %12 = vst [vmem:[#allocation2] sm:$0x1] %v11_v27 }
 0x23d   :  { %704 = vtanh.f32 %v370_v23 }
 0x23e   :  { %706 = vtanh.f32 %v375_v22 }
 0x243   :  { %v632_v48 = vld [vmem:[#allocation2] ss:$0 sm:$0xff] }
 0x24a   :  { %v705_v24 = vpop.eup %704 }
 0x24b   :  { %v707_v25 = vpop.eup %706  ;;  %667 = vmatprep.mubr.msk.f32.mxu0 %vm192_vm8, %v705_v24 }
 0x24c   :  { %668 = vmatmul.mubr.msk.f32.vlgmr.msra.gmra.mxu0 %vm192_vm8, %v707_v25 }
 0x30c   :  { %v669_v26 = vpop.f32.mrf.mxu0 }
 0x30d   :  { %v477_v11 = vadd.f32 %v669_v26, %v903_v39 }
 0x30e   :  { %v471_v28 = vpop.f32.mrf.mxu0 }
 0x30f   :  { %v472_v29 = vadd.f32 %v471_v28, %v393_v63 }
 0x311   :  { %708 = vtanh.f32 %v472_v29 }
 0x312   :  { %710 = vtanh.f32 %v477_v11 }
 0x31e   :  { %v709_v12 = vpop.eup %708 }
 0x31f   :  { %v711_v30 = vpop.eup %710  ;;  %674 = vmatprep.mubr.msk.f32.mxu1 %vm192_vm8, %v709_v12 }
 0x320   :  { %675 = vmatmul.mubr.msk.f32.vlgmr.msra.gmra.mxu1 %vm192_vm8, %v711_v30 }
 0x3e0   :  { %v676_v31 = vpop.f32.mrf.mxu1 }
 0x3e1   :  { %v579_v32 = vadd.f32 %v676_v31, %v918_v61 }
 0x3e2   :  { %v573_v33 = vpop.f32.mrf.mxu1 }
 0x3e3   :  { %712 = vtanh.f32 %v579_v32  ;;  %v574_v34 = vadd.f32 %v573_v33, %v495_v9 }
 0x3e5   :  { %714 = vtanh.f32 %v574_v34 }
 0x3f0   :  { %v713_v36 = vpop.eup %712 }
 0x3f1   :  { %v592_v39 = vmul.f32 %v713_v36, %v631_v35 }
 0x3f2   :  { %v715_v40 = vpop.eup %714 }
 0x3f3   :  { %v597_v42 = vsel %vm596_vm9, %v592_v39, 0.0  ;;  %v591_v43 = vmul.f32 %v715_v40, %v631_v35 }
 0x3f4   :  { %598 = vadd.xlane.f32.xlu1 %v597_v42 }
 0x3f5   :  { %v593_v47 = vsel %vm192_vm8, %v591_v43, 0.0 }
 0x3f6   :  { %594 = vadd.xlane.f32.xlu0 %v593_v47 }
 0x47d   :  { %v599_v49 = vpop.xlane.xlu1 %598 }
 0x47e   :  { %v608_v50 = vadd.f32 %v632_v48, %v599_v49 }
 0x47f   :  { %v595_v51 = vpop.xlane.xlu0 %594 }
 0x480   :  { %612 = vst.msk [vmem:[%s975_s6 + $0x8] sm:$0x3] %vm611_vm10, %v608_v50  ;;  %v607_v52 = vadd.f32 %v632_v48, %v595_v51 }
 0x482   :  { %610 = vst.msk [vmem:[%s975_s6] sm:$0xff] %vm609_vm11, %v607_v52 }

</bundles_post_ra>
